<compile_context>
chip_gen: v7x
topology: tpu7x:2x2x1
jax: 0.10.0
libtpu: 0.0.40
codegen_flags: <defaults>
</compile_context>

<pallas_src>
import math

import jax
import jax.numpy as jnp
from jax.experimental import pallas as pl
from jax.experimental.pallas import tpu as pltpu


def _inception_kernel(x_ref, w_ref, b_ref, o_ref):
    """One (batch block, output-column tile) per grid step.

    x_ref : (NB, Hp, CW)     bf16 padded input rows, (ci, wp) flattened on lanes
    w_ref : (KK*CW, CT)      bf16 banded combined weight (one Cout*W column tile)
    b_ref : (1, CT)          f32 combined bias, repeated along w
    o_ref : (NB, H, CT)      output rows, (co, w) flattened on lanes
    """
    NB, Hp, CW = x_ref.shape
    H = o_ref.shape[1]
    CT = o_ref.shape[2]
    KK = Hp - H + 1                       # 2*num_kernels - 1 vertical taps

    x = x_ref[...]                        # (NB, Hp, CW)
    # Implicit im2col along H: lane-concat the KK shifted row windows, then one
    # deep-K MXU matmul: M = NB*H, K = KK*CW, N = CT.
    lhs = jnp.concatenate([x[:, dh:dh + H, :] for dh in range(KK)], axis=-1)
    lhs = lhs.reshape(NB * H, KK * CW)
    acc = jax.lax.dot_general(
        lhs, w_ref[...],
        dimension_numbers=(((1,), (0,)), ((), ())),
        preferred_element_type=jnp.float32)                  # (NB*H, CT) f32
    out = acc + b_ref[...]                                   # bias broadcast
    o_ref[...] = out.reshape(NB, H, CT).astype(o_ref.dtype)


def _combined_weight(weights, num_kernels):
    """Zero-pad each HWIO weight to (2K-1, 2K-1) centred, sum, scale by 1/K."""
    KK = 2 * num_kernels - 1
    _, _, cin, cout = weights[0].shape
    wc = jnp.zeros((KK, KK, cin, cout), jnp.float32)
    for i, w in enumerate(weights):
        off = (num_kernels - 1) - i
        k = 2 * i + 1
        wc = wc.at[off:off + k, off:off + k, :, :].add(w.astype(jnp.float32))
    return wc / float(num_kernels)


def _banded_width_weight(wc, w_out, w_pad):
    """B[dh, ci*Wp+wp, co*W+w] = wc[dh, wp-w, ci, co] (0 if wp-w not in [0, KK))."""
    kk, _, cin, cout = wc.shape
    dw = jnp.arange(kk)[:, None, None]
    wp = jnp.arange(w_pad)[None, :, None]
    w = jnp.arange(w_out)[None, None, :]
    onehot = (wp == w + dw).astype(wc.dtype)             # (KK, Wp, W)
    b = jnp.einsum('abio,bpq->aipoq', wc, onehot)        # (KK, Cin, Wp, Cout, W)
    return b.reshape(kk, cin * w_pad, cout * w_out)


def inception_block_v1(x_nchw, weights, biases):
    """weights[i]: (2i+1, 2i+1, Cin, Cout) HWIO; biases[i]: (Cout,)."""
    num_kernels = len(weights)
    N, Cin, H, W = x_nchw.shape
    Cout = weights[0].shape[-1]
    pad = num_kernels - 1
    KK = 2 * num_kernels - 1
    Hp, Wp = H + 2 * pad, W + 2 * pad

    # Pad Wp so Cin*Wp is an exact multiple of 128 (lane-dense K dimension).
    if 128 % Cin == 0:
        grp = 128 // Cin
        Wp_pad = -(-Wp // grp) * grp
    else:
        Wp_pad = Wp
    CW = Cin * Wp_pad
    CoutW = Cout * W

    # ---- weight / bias prep (pure XLA, once) -------------------------------
    wc = _combined_weight(weights, num_kernels)                  # (KK,KK,Cin,Cout)
    w_banded = _banded_width_weight(wc, W, Wp_pad)               # (KK, CW, CoutW)
    w_banded = w_banded.reshape(KK * CW, CoutW).astype(jnp.bfloat16)
    b_comb = sum(b.astype(jnp.float32) for b in biases) / float(num_kernels)
    b_flat = jnp.repeat(b_comb.reshape(Cout), W).reshape(1, CoutW)

    # ---- activation layout: (N, Hp, Cin*Wp_pad), bf16 -----------------------
    x_pad = jnp.pad(x_nchw, ((0, 0), (0, 0), (pad, pad), (pad, pad + (Wp_pad - Wp))))
    xr = x_pad.transpose(0, 2, 1, 3).reshape(N, Hp, CW).astype(jnp.bfloat16)

    # ---- batch blocking so the MXU M dimension is ~256 ----------------------
    NB = max(1, min(N, 256 // max(H, 1)))
    n_steps = -(-N // NB)
    N_pad = n_steps * NB
    if N_pad != N:
        xr = jnp.pad(xr, ((0, N_pad - N), (0, 0), (0, 0)))

    # ---- column tiling of the banded weight (VMEM guard, esp. v7x) ----------
    budget = 4 << 20                                   # per weight tile, bytes
    itemsize = jnp.dtype(jnp.bfloat16).itemsize
    divisors = [d for d in range(Cout, 0, -1)
                if Cout % d == 0 and (d == Cout or (d * W) % 128 == 0)]
    co_tile = divisors[-1]                             # smallest valid fallback
    for d in divisors:                                 # largest first
        if KK * CW * (d * W) * itemsize <= budget:
            co_tile = d
            break
    CT = co_tile * W
    n_col = CoutW // CT

    # Invariant operands: single-buffer when they never change across the grid.
    const_mode = dict(pipeline_mode=pl.Buffered(1)) if n_col == 1 else {}

    out_flat = pl.pallas_call(
        _inception_kernel,
        out_shape=jax.ShapeDtypeStruct((N_pad, H, CoutW), x_nchw.dtype),
        grid=(n_steps, n_col),
        in_specs=[
            pl.BlockSpec((NB, Hp, CW), lambda n, j: (n, 0, 0)),
            pl.BlockSpec((KK * CW, CT), lambda n, j: (0, j), **const_mode),
            pl.BlockSpec((1, CT), lambda n, j: (0, j), **const_mode),
        ],
        out_specs=pl.BlockSpec((NB, H, CT), lambda n, j: (n, 0, j)),
        compiler_params=pltpu.CompilerParams(
            dimension_semantics=("parallel", "parallel")),
    )(xr, w_banded, b_flat)

    # (N, H, Cout*W) -> (N, H, Cout, W) -> NCHW
    return out_flat[:N].reshape(N, H, Cout, W).transpose(0, 2, 1, 3)


def _reference_forward(x_nchw, weights, biases):
    """Pure-JAX (f32) reference identical to the PyTorch module."""
    num_kernels = len(weights)
    outs = []
    for i in range(num_kernels):
        o = jax.lax.conv_general_dilated(
            x_nchw, weights[i],
            window_strides=(1, 1),
            padding=[(i, i), (i, i)],
            dimension_numbers=("NCHW", "HWIO", "NCHW"),
        )
        o = o + biases[i].reshape(1, -1, 1, 1)
        outs.append(o)
    return jnp.stack(outs, axis=-1).mean(-1)


if __name__ == "__main__":
    # Small shapes consistent with the module: NCHW input.
    N, C_in, C_out, H, W = 2, 4, 8, 16, 16
    num_kernels = 6

    key = jax.random.PRNGKey(0)
    key, xk = jax.random.split(key)
    x = jax.random.normal(xk, (N, C_in, H, W), jnp.float32)

    # Deterministic parameter init mirroring nn.init.kaiming_normal_
    # (mode='fan_out', nonlinearity='relu'): std = sqrt(2 / (C_out * k * k)).
    weights, biases = [], []
    for i in range(num_kernels):
        k = 2 * i + 1
        key, wk = jax.random.split(key)
        std = math.sqrt(2.0 / (C_out * k * k))
        w = jax.random.normal(wk, (k, k, C_in, C_out), jnp.float32) * std
        b = jnp.zeros((C_out,), jnp.float32)   # bias initialized to 0
        weights.append(w)
        biases.append(b)

    out = jax.block_until_ready(inception_block_v1(x, weights, biases))
    ref = jax.block_until_ready(_reference_forward(x, weights, biases))

    assert out.shape == (N, C_out, H, W), out.shape
    err = float(jnp.max(jnp.abs(out - ref)))
    # Kernel runs weights/activations in bf16 (f32 accumulation) vs f32 ref.
    assert jnp.allclose(out, ref, rtol=3e-2, atol=3e-2), err

    print("KERNEL_OK")
</pallas_src>

<mosaic_0001>
module attributes {stable_mosaic.version = 11 : i64} {
  func.func @_inception_kernel(%arg0: i32, %arg1: i32, %arg2: memref<2x26x128xbf16, #tpu.memory_space<vmem>>, %arg3: memref<1408x128xbf16, #tpu.memory_space<vmem>>, %arg4: memref<1x128xf32, #tpu.memory_space<vmem>>, %arg5: memref<2x16x128xf32, #tpu.memory_space<vmem>>) attributes {dimension_semantics = [#tpu.dimension_semantics<parallel>, #tpu.dimension_semantics<parallel>], iteration_bounds = array<i64: 1, 1>, scalar_prefetch = 0 : i64, scratch_operands = 0 : i64, tpu.core_type = #tpu.core_type<tc>, window_params = [{transform_indices = @transform_0, window_bounds = array<i64: 2, 26, 128>}, {pipeline_mode = #tpu.pipeline_mode<synchronous>, transform_indices = @transform_1, window_bounds = array<i64: 1408, 128>}, {pipeline_mode = #tpu.pipeline_mode<synchronous>, transform_indices = @transform_2, window_bounds = array<i64: 1, 128>}, {transform_indices = @transform_3, window_bounds = array<i64: 2, 16, 128>}]} {
    %c0 = arith.constant 0 : index
    %c0_0 = arith.constant 0 : index
    %c0_1 = arith.constant 0 : index
    %0 = vector.load %arg2[%c0, %c0_0, %c0_1] : memref<2x26x128xbf16, #tpu.memory_space<vmem>>, vector<2x26x128xbf16>
    %1 = vector.extract_strided_slice %0 {offsets = [0, 0, 0], sizes = [2, 16, 128], strides = [1, 1, 1]} : vector<2x26x128xbf16> to vector<2x16x128xbf16>
    %2 = vector.extract_strided_slice %0 {offsets = [0, 1, 0], sizes = [2, 16, 128], strides = [1, 1, 1]} : vector<2x26x128xbf16> to vector<2x16x128xbf16>
    %3 = vector.extract_strided_slice %0 {offsets = [0, 2, 0], sizes = [2, 16, 128], strides = [1, 1, 1]} : vector<2x26x128xbf16> to vector<2x16x128xbf16>
    %4 = vector.extract_strided_slice %0 {offsets = [0, 3, 0], sizes = [2, 16, 128], strides = [1, 1, 1]} : vector<2x26x128xbf16> to vector<2x16x128xbf16>
    %5 = vector.extract_strided_slice %0 {offsets = [0, 4, 0], sizes = [2, 16, 128], strides = [1, 1, 1]} : vector<2x26x128xbf16> to vector<2x16x128xbf16>
    %6 = vector.extract_strided_slice %0 {offsets = [0, 5, 0], sizes = [2, 16, 128], strides = [1, 1, 1]} : vector<2x26x128xbf16> to vector<2x16x128xbf16>
    %7 = vector.extract_strided_slice %0 {offsets = [0, 6, 0], sizes = [2, 16, 128], strides = [1, 1, 1]} : vector<2x26x128xbf16> to vector<2x16x128xbf16>
    %8 = vector.extract_strided_slice %0 {offsets = [0, 7, 0], sizes = [2, 16, 128], strides = [1, 1, 1]} : vector<2x26x128xbf16> to vector<2x16x128xbf16>
    %9 = vector.extract_strided_slice %0 {offsets = [0, 8, 0], sizes = [2, 16, 128], strides = [1, 1, 1]} : vector<2x26x128xbf16> to vector<2x16x128xbf16>
    %10 = vector.extract_strided_slice %0 {offsets = [0, 9, 0], sizes = [2, 16, 128], strides = [1, 1, 1]} : vector<2x26x128xbf16> to vector<2x16x128xbf16>
    %11 = vector.extract_strided_slice %0 {offsets = [0, 10, 0], sizes = [2, 16, 128], strides = [1, 1, 1]} : vector<2x26x128xbf16> to vector<2x16x128xbf16>
    %12 = tpu.concatenate %1, %2, %3, %4, %5, %6, %7, %8, %9, %10, %11 in 2 : vector<2x16x128xbf16>, vector<2x16x128xbf16>, vector<2x16x128xbf16>, vector<2x16x128xbf16>, vector<2x16x128xbf16>, vector<2x16x128xbf16>, vector<2x16x128xbf16>, vector<2x16x128xbf16>, vector<2x16x128xbf16>, vector<2x16x128xbf16>, vector<2x16x128xbf16> -> vector<2x16x1408xbf16>
    %13 = vector.shape_cast %12 : vector<2x16x1408xbf16> to vector<32x1408xbf16>
    %c0_2 = arith.constant 0 : index
    %c0_3 = arith.constant 0 : index
    %14 = vector.load %arg3[%c0_2, %c0_3] : memref<1408x128xbf16, #tpu.memory_space<vmem>>, vector<1408x128xbf16>
    %cst = arith.constant dense<0.000000e+00> : vector<32x128xf32>
    %15 = tpu.matmul %13, %14, %cst {dimension_numbers = #tpu.dot_dimension_numbers<[1], [0], [0], [1], [0, 0, 1, 1], [], []>} : vector<32x1408xbf16>, vector<1408x128xbf16>, vector<32x128xf32> -> vector<32x128xf32>
    %c0_4 = arith.constant 0 : index
    %c0_5 = arith.constant 0 : index
    %16 = vector.load %arg4[%c0_4, %c0_5] : memref<1x128xf32, #tpu.memory_space<vmem>>, vector<1x128xf32>
    %17 = vector.broadcast %16 : vector<1x128xf32> to vector<32x128xf32>
    %18 = arith.addf %15, %17 : vector<32x128xf32>
    %19 = vector.shape_cast %18 : vector<32x128xf32> to vector<2x16x128xf32>
    %c0_6 = arith.constant 0 : index
    %c0_7 = arith.constant 0 : index
    %c0_8 = arith.constant 0 : index
    %20 = vector.load %arg5[%c0_6, %c0_7, %c0_8] : memref<2x16x128xf32, #tpu.memory_space<vmem>>, vector<2x16x128xf32>
    tpu.vector_store %arg5[%c0_6, %c0_7, %c0_8], %19 {strides = array<i32>} : memref<2x16x128xf32, #tpu.memory_space<vmem>>, vector<2x16x128xf32>,
    return
  }
  func.func @transform_0(%arg0: i32, %arg1: i32) -> (i32, i32, i32) {
    %c0_i32 = arith.constant 0 : i32
    %c0_i32_0 = arith.constant 0 : i32
    %c0_i32_1 = arith.constant 0 : i32
    return %arg0, %c0_i32, %c0_i32_0 : i32, i32, i32
  }
  func.func @transform_1(%arg0: i32, %arg1: i32) -> (i32, i32) {
    %c0_i32 = arith.constant 0 : i32
    %c0_i32_0 = arith.constant 0 : i32
    return %c0_i32, %arg1 : i32, i32
  }
  func.func @transform_2(%arg0: i32, %arg1: i32) -> (i32, i32) {
    %c0_i32 = arith.constant 0 : i32
    %c0_i32_0 = arith.constant 0 : i32
    return %c0_i32, %arg1 : i32, i32
  }
  func.func @transform_3(%arg0: i32, %arg1: i32) -> (i32, i32, i32) {
    %c0_i32 = arith.constant 0 : i32
    %c0_i32_0 = arith.constant 0 : i32
    return %arg0, %c0_i32, %arg1 : i32, i32, i32
  }
}

</mosaic_0001>

<bundles_post_ra>
// kernel: tpu_custom_call.1
= control target key start
LH: loop header
LB: loop body
LE: loop exit
PB: predicated region body
PF: predicated region fallthrough
CT: control target
= control target key end

     0   :  { %8 = vsyncpa [#allocation3], 0  ;;  %s1851_s0 = inlined_call_operand.vmem [shape: bf16[2,26,128], index: 0, kind: input, shape index: {}]   ;;  %s1852_s1 = inlined_call_operand.hbm [shape: bf16[1408,128], index: 1, kind: input, shape index: {}]   ;;  %s1853_s2 = inlined_call_operand.vmem [shape: f32[1,128], index: 2, kind: input, shape index: {}]   ;;  %s1854_s3 = inlined_call_operand.hbm [shape: f32[2,16,128], index: 3, kind: output, shape index: {}]  }
   0x1   :  { %9 = vsyncpa [#allocation4], 0  ;;  %s1652_s12 = smov [#allocation2]   ;;  %s1604_s16 = scalar_lea.hbm %s1852_s1, 11264 }
   0x2   :  { %s17_s13 = sshll.u32 %s1652_s12, 4  ;;  %p1605_p0 = scmp.ne.s32.totalorder %s1852_s1, %s1604_s16  ;;  %s18_s13 = int_to_ptr.vmem [resolvable:$true] %s17_s13 }
   0x3   :  { %p1608_p1 = scmp.lt.u32.totalorder %s1604_s16, %s1852_s1 }
   0x5   :  { %p1610_p2 = pnand %p1608_p1, %p1605_p0 }
   0x7   :  { %1613 = shalt.err (!%p1610_p2)
}
   0x8   :  { %s1614_s21 = scalar_lea.vmem %s18_s13, 11264  ;;  %p1619_p4 = scmp.lt.s32.totalorder %s18_s13, %s18_s13 }
   0x9   :  { %p1615_p3 = scmp.ne.s32.totalorder %s18_s13, %s1614_s21  ;;  %p1620_p5 = scmp.lt.s32.totalorder %s1614_s21, %s1614_s21 }
   0xb   :  { %p1621_p6 = por %p1620_p5, %p1619_p4 }
   0xd   :  { %p1622_p7 = pnand %p1621_p6, %p1615_p3 }
   0xf   :  { %1625 = shalt.err (!%p1622_p7)
}
  0x10   :  { %s1653_s22 = smov 64   ;;  %s1654_s23 = smov 4  }
  0x11   :  { %23 = dma.hbm_to_vmem [thread:$0]  %s1852_s1, 11264, %s18_s13, [#allocation3], %s1653_s22, %s1653_s22, %s1654_s23  }
  0x12   :  { %1648 = dma.done.wait [#allocation3], 11264  }
  0x13   :  { %1649 = vsyncadd [#allocation3], 4294956032  ;;  %v1508_v0 = vld [vmem:[#allocation2 + $0x40] sm:$0xff]   ;;  %v1512_v4 = vld [vmem:[#allocation2 + $0x48] sm:$0xff]   ;;  %vm56_vm0 = vsmask.f32 7424 }
  0x14   :  { %v1509_v1 = vld [vmem:[#allocation2] sm:$0xff]   ;;  %1332 = vmatprep.subr.bf16.mxu0 %v1508_v0  ;;  %v1513_v5 = vld [vmem:[#allocation2 + $0x8] sm:$0xff]   ;;  %v1516_v8 = vld [vmem:[#allocation2 + $0x50] sm:$0xff]   ;;  %vm92_vm1 = vsmask.f32 6400  ;;  %vm83_vm2 = vcmask 1046528  }
  0x15   :  { %v1510_v2 = vld [vmem:[#allocation2 + $0xc0] sm:$0xff]   ;;  %1333 = vmatpush3.bf16.msra.mxu0 %v1509_v1  ;;  %v1514_v6 = vld [vmem:[#allocation2 + $0xc8] sm:$0xff]   ;;  %v1517_v9 = vld [vmem:[#allocation2 + $0x10] sm:$0xff]   ;;  %vm122_vm3 = vsmask.f32 5376  ;;  %vm113_vm5 = vcmask 1045504  }
  0x16   :  { %v1511_v3 = vld [vmem:[#allocation2 + $0x80] sm:$0xff]   ;;  %1360 = vmatprep.subr.bf16.mxu1 %v1510_v2  ;;  %1334 = vmatprep.subr.bf16.mxu0 %v1512_v4  ;;  %v1515_v7 = vld [vmem:[#allocation2 + $0x88] sm:$0xff]   ;;  %v1518_v10 = vld [vmem:[#allocation2 + $0xd0] sm:$0xff]   ;;  %vm148_vm4 = vsmask.f32 4352  ;;  %vm139_vm6 = vcmask 1044480  }
  0x17   :  { %1361 = vmatpush3.bf16.msra.mxu1 %v1511_v3  ;;  %v1519_v11 = vld [vmem:[#allocation2 + $0x90] sm:$0xff]   ;;  %v1520_v12 = vld [vmem:[#allocation2 + $0x58] sm:$0xff]   ;;  %v1524_v16 = vld [vmem:[#allocation2 + $0x60] sm:$0xff]  }
  0x18   :  { %1362 = vmatprep.subr.bf16.mxu1 %v1514_v6  ;;  %v1521_v13 = vld [vmem:[#allocation2 + $0x18] sm:$0xff]   ;;  %v1525_v17 = vld [vmem:[#allocation2 + $0x20] sm:$0xff]   ;;  %v1528_v20 = vld [vmem:[#allocation2 + $0x68] sm:$0xff]  }
  0x19   :  { %1335 = vmatpush3.bf16.msra.mxu0 %v1513_v5  ;;  %v1522_v14 = vld [vmem:[#allocation2 + $0xd8] sm:$0xff]   ;;  %v1526_v18 = vld [vmem:[#allocation2 + $0xe0] sm:$0xff]   ;;  %v1529_v21 = vld [vmem:[#allocation2 + $0x28] sm:$0xff]  }
  0x1a   :  { %1336 = vmatprep.subr.bf16.mxu0 %v1516_v8  ;;  %v1523_v15 = vld [vmem:[#allocation2 + $0x98] sm:$0xff]   ;;  %v1527_v19 = vld [vmem:[#allocation2 + $0xa0] sm:$0xff]   ;;  %v1530_v22 = vld [vmem:[#allocation2 + $0xe8] sm:$0xff]  }
  0x1b   :  { %1363 = vmatpush3.bf16.msra.mxu1 %v1515_v7  ;;  %v1531_v23 = vld [vmem:[#allocation2 + $0xa8] sm:$0xff]   ;;  %v1532_v24 = vld [vmem:[#allocation2 + $0x70] sm:$0xff]   ;;  %v1536_v28 = vld [vmem:[#allocation2 + $0x78] sm:$0xff]  }
  0x1c   :  { %1364 = vmatprep.subr.bf16.mxu1 %v1518_v10  ;;  %v1533_v25 = vld [vmem:[#allocation2 + $0x30] sm:$0xff]   ;;  %v1537_v29 = vld [vmem:[#allocation2 + $0x38] sm:$0xff]   ;;  %v30_v31 = vld [vmem:[%s1851_s0] sm:$0xf] }
  0x1d   :  { %1337 = vmatpush3.bf16.msra.mxu0 %v1517_v9  ;;  %v1534_v26 = vld [vmem:[#allocation2 + $0xf0] sm:$0xff]   ;;  %v1538_v30 = vld [vmem:[#allocation2 + $0xf8] sm:$0xff]   ;;  %v1696_v32 = vld [vmem:[%s1851_s0 + $0x4] sm:$0xf] }
  0x1e   :  { %1338 = vmatprep.subr.bf16.mxu0 %v1520_v12  ;;  %v1535_v27 = vld [vmem:[#allocation2 + $0xb0] sm:$0xff]   ;;  %v1701_v33 = vld [vmem:[%s1851_s0 + $0x8] sm:$0xf]  ;;  %v1704_v34 = vcombine.low %v30_v31, %v1696_v32  ;;  %v1541_v36 = vld [vmem:[#allocation2 + $0xb8] sm:$0xff]  }
  0x1f   :  { %1365 = vmatpush3.bf16.msra.mxu1 %v1519_v11  ;;  %v1708_v35 = vcombine.low %v1701_v33, %v1701_v33  ;;  %v1542_v37 = vld [vmem:[#allocation2 + $0x140] sm:$0xff]   ;;  %v1546_v58 = vld [vmem:[#allocation2 + $0x148] sm:$0xff]   ;;  %v1550_v63 = vld [vmem:[#allocation2 + $0x150] sm:$0xff]  }
  0x20   :  { %1366 = vmatprep.subr.bf16.mxu1 %v1522_v14  ;;  %v1711_v38 = vshrl.u32 %v1704_v34, 16  ;;  %v1714_v39 = vshll.u32 %v1704_v34, 16  ;;  %v84_v42 = vrot.slane %v1704_v34, 1  ;;  %v1544_v44 = vld [vmem:[#allocation2 + $0x1c0] sm:$0xff]   ;;  %v1548_v60 = vld [vmem:[#allocation2 + $0x1c8] sm:$0xff]   ;;  %v1552_v0 = vld [vmem:[#allocation2 + $0x1d0] sm:$0xff]  }
  0x21   :  { %1339 = vmatpush3.bf16.msra.mxu0 %v1521_v13  ;;  %v1717_v40 = vshll.u32 %v1708_v35, 16  ;;  %v1720_v41 = vshrl.u32 %v1708_v35, 16  ;;  %v85_v43 = vrot.slane %v1708_v35, 1  ;;  %v1543_v53 = vld [vmem:[#allocation2 + $0x100] sm:$0xff]   ;;  %v1547_v61 = vld [vmem:[#allocation2 + $0x108] sm:$0xff]   ;;  %v1551_v1 = vld [vmem:[#allocation2 + $0x110] sm:$0xff]  }
  0x22   :  { %1340 = vmatprep.subr.bf16.mxu0 %v1524_v16  ;;  %v62_v45 = vrot.slane %v1714_v39, 1  ;;  %v93_v47 = vrot.slane %v1711_v38, 1  ;;  %v94_v48 = vrot.slane %v1714_v39, 2  ;;  %v1545_v55 = vld [vmem:[#allocation2 + $0x180] sm:$0xff]   ;;  %v1549_v62 = vld [vmem:[#allocation2 + $0x188] sm:$0xff]   ;;  %v1553_v2 = vld [vmem:[#allocation2 + $0x190] sm:$0xff]  }
  0x23   :  { %1367 = vmatpush3.bf16.msra.mxu1 %v1523_v15  ;;  %v67_v46 = vrot.slane %v1717_v40, 1  ;;  %v98_v49 = vrot.slane %v1720_v41, 1  ;;  %v99_v50 = vrot.slane %v1717_v40, 2  ;;  %v86_v57 = vsel %vm83_vm2, %v84_v42, %v85_v43  ;;  %v1554_v3 = vld [vmem:[#allocation2 + $0x158] sm:$0xff]   ;;  %v1558_v11 = vld [vmem:[#allocation2 + $0x160] sm:$0xff]  }
  0x24   :  { %1368 = vmatprep.subr.bf16.mxu1 %v1526_v18  ;;  %v63_v51 = vor.u32 %v62_v45, %v1711_v38  ;;  %v95_v52 = vor.u32 %v94_v48, %v93_v47  ;;  %v123_v4 = vrot.slane %v1711_v38, 2  ;;  %v1556_v5 = vld [vmem:[#allocation2 + $0x1d8] sm:$0xff]   ;;  %v124_v6 = vrot.slane %v1714_v39, 3  ;;  %v1559_v13 = vld [vmem:[#allocation2 + $0x120] sm:$0xff]   ;;  %v1562_v18 = vld [vmem:[#allocation2 + $0x168] sm:$0xff]  }
  0x25   :  { %1341 = vmatpush3.bf16.msra.mxu0 %v1525_v17  ;;  %v100_v54 = vor.u32 %v99_v50, %v98_v49  ;;  %v1555_v7 = vld [vmem:[#allocation2 + $0x118] sm:$0xff]   ;;  %v126_v8 = vrot.slane %v1720_v41, 2  ;;  %v127_v10 = vrot.slane %v1717_v40, 3  ;;  %v114_v12 = vrot.slane %v1704_v34, 2  ;;  %v1560_v14 = vld [vmem:[#allocation2 + $0x1e0] sm:$0xff]   ;;  %v1569_v50 = vld [vmem:[#allocation2 + $0x130] sm:$0xff]  }
  0x26   :  { %1342 = vmatprep.subr.bf16.mxu0 %v1528_v20  ;;  %v68_v56 = vsel %vm56_vm0, %v63_v51, %v67_v46  ;;  %v1557_v9 = vld [vmem:[#allocation2 + $0x198] sm:$0xff]   ;;  %v115_v15 = vrot.slane %v1708_v35, 2  ;;  %v1561_v16 = vld [vmem:[#allocation2 + $0x1a0] sm:$0xff]   ;;  %v149_v17 = vrot.slane %v1711_v38, 3  ;;  %v150_v20 = vrot.slane %v1714_v39, 4 }
  0x27   :  { %1369 = vmatpush3.bf16.msra.mxu1 %v1527_v19  ;;  %952 = vmatprep.mubr.bf16.mxu0 %v68_v56  ;;  %v101_v59 = vsel %vm92_vm1, %v95_v52, %v100_v54  ;;  %v34_v19 = vld [vmem:[%s1851_s0 + $0x10] sm:$0xf]  ;;  %v125_v47 = vor.u32 %v124_v6, %v123_v4  ;;  %v128_v51 = vor.u32 %v127_v10, %v126_v8  ;;  %v140_v52 = vrot.slane %v1704_v34, 3  ;;  %v1574_v4 = vld [vmem:[#allocation2 + $0x1f8] sm:$0xff]  }
  0x28   :  { %1370 = vmatprep.subr.bf16.mxu1 %v1530_v22  ;;  %1001 = vmatprep.mubr.bf16.mxu1 %v101_v59  ;;  %v1754_v22 = vld [vmem:[%s1851_s0 + $0x18] sm:$0xf]  ;;  %v1570_v54 = vld [vmem:[#allocation2 + $0x1f0] sm:$0xff]   ;;  %v141_v6 = vrot.slane %v1708_v35, 3 }
  0x29   :  { %1343 = vmatpush3.bf16.msra.mxu0 %v1529_v21  ;;  %v1749_v21 = vld [vmem:[%s1851_s0 + $0x14] sm:$0xf] }
  0x2a   :  { %1344 = vmatprep.subr.bf16.mxu0 %v1532_v24  ;;  %v1761_v24 = vcombine.low %v1754_v22, %v1754_v22 }
  0x2b   :  { %1371 = vmatpush3.bf16.msra.mxu1 %v1531_v23  ;;  %v1757_v23 = vcombine.low %v34_v19, %v1749_v21 }
  0x2c   :  { %1372 = vmatprep.subr.bf16.mxu1 %v1534_v26  ;;  %v152_v26 = vrot.slane %v1720_v41, 3  ;;  %v1772_v31 = vshll.u32 %v1761_v24, 16  ;;  %v88_v39 = vrot.slane %v1761_v24, 1 }
  0x2d   :  { %1345 = vmatpush3.bf16.msra.mxu0 %v1533_v25  ;;  %v1565_v25 = vld [vmem:[#allocation2 + $0x128] sm:$0xff]   ;;  %v87_v38 = vrot.slane %v1757_v23, 1 }
  0x2e   :  { %1346 = vmatprep.subr.bf16.mxu0 %v1536_v28  ;;  %v153_v28 = vrot.slane %v1717_v40, 4  ;;  %v1568_v40 = vld [vmem:[#allocation2 + $0x170] sm:$0xff]   ;;  %v79_v42 = vrot.slane %v1772_v31, 1  ;;  %v108_v46 = vrot.slane %v1772_v31, 2 }
  0x2f   :  { %1373 = vmatpush3.bf16.msra.mxu1 %v1535_v27  ;;  %v1566_v27 = vld [vmem:[#allocation2 + $0x1e8] sm:$0xff]   ;;  %v89_v59 = vsel %vm83_vm2, %v87_v38, %v88_v39  ;;  %v1583_v39 = vld [vmem:[#allocation2 + $0x210] sm:$0xff]  }
  0x30   :  { %1374 = vmatprep.subr.bf16.mxu1 %v1538_v30  ;;  %v1769_v30 = vshll.u32 %v1757_v23, 16  ;;  %v154_v56 = vor.u32 %v153_v28, %v152_v26  ;;  %v1579_v26 = vld [vmem:[#allocation2 + $0x280] sm:$0xff]  }
  0x31   :  { %1347 = vmatpush3.bf16.msra.mxu0 %v1537_v29  ;;  %v1766_v29 = vshrl.u32 %v1757_v23, 16 }
  0x32   :  { %1388 = vmatprep.subr.bf16.mxu0 %v1542_v37  ;;  %v1567_v37 = vld [vmem:[#allocation2 + $0x1a8] sm:$0xff]   ;;  %v74_v41 = vrot.slane %v1769_v30, 1  ;;  %v157_v10 = vrot.slane %v1769_v30, 4 }
  0x33   :  { %1375 = vmatpush3.bf16.msra.mxu1 %v1541_v36  ;;  %v1775_v36 = vshrl.u32 %v1761_v24, 16  ;;  %v102_v43 = vrot.slane %v1766_v29, 1  ;;  %v156_v8 = vrot.slane %v1766_v29, 3 }
  0x34   :  { %1416 = vmatprep.subr.bf16.mxu1 %v1544_v44  ;;  %953 = vmatmul.mubr.bf16.vlgmr.msra.gmra.mrb[0].mxu0 %v1704_v34  ;;  %v103_v44 = vrot.slane %v1769_v30, 2  ;;  %v75_v48 = vor.u32 %v74_v41, %v1766_v29  ;;  %v118_v34 = vrot.slane %v1761_v24, 2  ;;  %v1584_v41 = vld [vmem:[#allocation2 + $0x258] sm:$0xff]  }
  0x35   :  { %1389 = vmatpush3.bf16.msra.mxu0 %v1543_v53  ;;  %v107_v45 = vrot.slane %v1775_v36, 1  ;;  %v158_v19 = vor.u32 %v157_v10, %v156_v8 }
  0x36   :  { %1002 = vmatmul.mubr.bf16.vlgmr.msra.gmra.mrb[0].mxu1 %v86_v57  ;;  %1390 = vmatprep.subr.bf16.mxu0 %v1546_v58  ;;  %v104_v49 = vor.u32 %v103_v44, %v102_v43  ;;  %v130_v57 = vrot.slane %v1766_v29, 2  ;;  %v80_v58 = vsel %vm56_vm0, %v75_v48, %v79_v42  ;;  %v1580_v29 = vld [vmem:[#allocation2 + $0x208] sm:$0xff]   ;;  %v1818_v42 = vcombine.low %v1696_v32, %v1701_v33  ;;  %v1587_v43 = vld [vmem:[#allocation2 + $0x260] sm:$0xff]  }
  0x37   :  { %1417 = vmatpush3.bf16.msra.mxu1 %v1545_v55  ;;  %v109_v53 = vor.u32 %v108_v46, %v107_v45  ;;  %v151_v55 = vor.u32 %v150_v20, %v149_v17  ;;  %960 = vmatprep.mubr.bf16.mxu0 %v80_v58  ;;  %v116_v17 = vsel %vm113_vm5, %v114_v12, %v115_v15  ;;  %v160_v20 = vrot.slane %v1772_v31, 4  ;;  %v1582_v12 = vld [vmem:[#allocation2 + $0x288] sm:$0xff]   ;;  %v1591_v44 = vld [vmem:[#allocation2 + $0x2a0] sm:$0xff]   ;;  %v1595_v58 = vld [vmem:[#allocation2 + $0x230] sm:$0xff]  }
  0x38   :  { %1418 = vmatprep.subr.bf16.mxu1 %v1548_v60  ;;  %v1571_v60 = vld [vmem:[#allocation2 + $0x1b0] sm:$0xff]   ;;  %v178_v45 = vshll.u32 %v1818_v42, 16  ;;  %v1589_v46 = vld [vmem:[#allocation2 + $0x220] sm:$0xff]   ;;  %v176_v48 = vshrl.u32 %v1818_v42, 16  ;;  %v1240_v32 = vcombine.low %v1749_v21, %v1754_v22  ;;  %v1594_v33 = vld [vmem:[#allocation2 + $0x2a8] sm:$0xff]  }
  0x39   :  { %1391 = vmatpush3.bf16.msra.mxu0 %v1547_v61  ;;  %v131_v61 = vrot.slane %v1769_v30, 3  ;;  %v143_v30 = vrot.slane %v1757_v23, 3  ;;  %v1603_v22 = vld [vmem:[%s1851_s0 + $0x1c] ss:$0 sps:$4 sm:$0x11]  }
  0x3a   :  { %1392 = vmatprep.subr.bf16.mxu0 %v1550_v63  ;;  %v1572_v63 = vld [vmem:[#allocation2 + $0x178] sm:$0xff]  }
  0x3b   :  { %1419 = vmatpush3.bf16.msra.mxu1 %v1549_v62  ;;  %v110_v62 = vsel %vm92_vm1, %v104_v49, %v109_v53  ;;  %v180_v49 = vrot.slane %v178_v45, 1  ;;  %v1593_v53 = vld [vmem:[#allocation2 + $0x270] sm:$0xff]  }
  0x3c   :  { %1420 = vmatprep.subr.bf16.mxu1 %v1552_v0  ;;  %v133_v0 = vrot.slane %v1775_v36, 2  ;;  %961 = vmatmul.mubr.bf16.gmra.mrb[4].mxu0 %v1757_v23 }
  0x3d   :  { %1393 = vmatpush3.bf16.msra.mxu0 %v1551_v1  ;;  %1009 = vmatprep.mubr.bf16.mxu1 %v110_v62  ;;  %v1573_v1 = vld [vmem:[#allocation2 + $0x138] sm:$0xff]   ;;  %v188_v62 = vshrl.u32 %v1240_v32, 16 }
  0x3e   :  { %1394 = vmatprep.subr.bf16.mxu0 %v1554_v3  ;;  %v134_v3 = vrot.slane %v1772_v31, 3  ;;  %1010 = vmatmul.mubr.bf16.gmra.mrb[4].mxu1 %v89_v59  ;;  %v1581_v31 = vld [vmem:[#allocation2 + $0x250] sm:$0xff]  }
  0x3f   :  { %1421 = vmatpush3.bf16.msra.mxu1 %v1553_v2  ;;  %v129_v2 = vsel %vm122_vm3, %v125_v47, %v128_v51  ;;  %v1590_v47 = vld [vmem:[#allocation2 + $0x268] sm:$0xff]  }
  0x40   :  { %1422 = vmatprep.subr.bf16.mxu1 %v1556_v5  ;;  %v155_v5 = vsel %vm148_vm4, %v151_v55, %v154_v56  ;;  %1050 = vmatprep.mubr.bf16.mxu0 %v129_v2  ;;  %v1592_v51 = vld [vmem:[#allocation2 + $0x228] sm:$0xff]   ;;  %v1597_v55 = vld [vmem:[#allocation2 + $0x2b0] sm:$0xff]   ;;  %v181_v56 = vor.u32 %v180_v49, %v176_v48  ;;  %v1601_v2 = vld [vmem:[#allocation2 + $0x2b8] sm:$0xff]  }
  0x41   :  { %1395 = vmatpush3.bf16.msra.mxu0 %v1555_v7  ;;  %v1575_v7 = vld [vmem:[#allocation2 + $0x1b8] sm:$0xff]   ;;  %1099 = vmatprep.mubr.bf16.mxu1 %v155_v5  ;;  %v205_v5 = vrot.slane %v1603_v22, 1 }
  0x42   :  { %1396 = vmatprep.subr.bf16.mxu0 %v1558_v11  ;;  %v1577_v11 = vld [vmem:[#allocation2 + $0x200] sm:$0xff]  }
  0x43   :  { %1423 = vmatpush3.bf16.msra.mxu1 %v1557_v9  ;;  %v1576_v9 = vld [vmem:[#allocation2 + $0x240] sm:$0xff]  }
  0x44   :  { %1424 = vmatprep.subr.bf16.mxu1 %v1560_v14  ;;  %v135_v14 = vor.u32 %v134_v3, %v133_v0  ;;  %v195_v0 = vshll.u32 %v1603_v22, 16  ;;  %v1598_v3 = vld [vmem:[#allocation2 + $0x238] sm:$0xff]  }
  0x45   :  { %1397 = vmatpush3.bf16.msra.mxu0 %v1559_v13  ;;  %v132_v13 = vor.u32 %v131_v61, %v130_v57  ;;  %v1596_v61 = vld [vmem:[#allocation2 + $0x278] sm:$0xff]  }
  0x46   :  { %1398 = vmatprep.subr.bf16.mxu0 %v1562_v18  ;;  %v1578_v18 = vld [vmem:[#allocation2 + $0x248] sm:$0xff]  }
  0x47   :  { %1425 = vmatpush3.bf16.msra.mxu1 %v1561_v16  ;;  %v159_v16 = vrot.slane %v1775_v36, 3  ;;  %v136_v35 = vsel %vm122_vm3, %v132_v13, %v135_v14  ;;  %v144_v36 = vrot.slane %v1761_v24, 3  ;;  %v1586_v24 = vld [vmem:[#allocation2 + $0x218] sm:$0xff]  }
  0x48   :  { %1426 = vmatprep.subr.bf16.mxu1 %v1566_v27  ;;  %v117_v27 = vrot.slane %v1757_v23, 2  ;;  %v1588_v23 = vld [vmem:[#allocation2 + $0x298] sm:$0xff]  }
  0x49   :  { %1399 = vmatpush3.bf16.msra.mxu0 %v1565_v25  ;;  %v142_v25 = vsel %vm139_vm6, %v140_v52, %v141_v6  ;;  %v161_v28 = vor.u32 %v160_v20, %v159_v16  ;;  %v1600_v52 = vld [vmem:[%s1851_s0 + $0xc] ss:$0 sps:$4 sm:$0x11]  }
  0x4a   :  { %1400 = vmatprep.subr.bf16.mxu0 %v1568_v40  ;;  %v119_v38 = vsel %vm113_vm5, %v117_v27, %v118_v34  ;;  %v145_v40 = vsel %vm139_vm6, %v143_v30, %v144_v36  ;;  %v183_v57 = vshll.u32 %v1600_v52, 16  ;;  %v202_v21 = vrot.slane %v1600_v52, 1 }
  0x4b   :  { %1427 = vmatpush3.bf16.msra.mxu1 %v1567_v37  ;;  %v162_v15 = vsel %vm148_vm4, %v158_v19, %v161_v28  ;;  %v1585_v37 = vld [vmem:[#allocation2 + $0x290] sm:$0xff]  }
  0x4c   :  { %1428 = vmatprep.subr.bf16.mxu1 %v1570_v54  ;;  %v190_v54 = vshll.u32 %v1240_v32, 16  ;;  %v185_v59 = vrot.slane %v183_v57, 1 }
  0x4d   :  { %1401 = vmatpush3.bf16.msra.mxu0 %v1569_v50  ;;  %v201_v50 = vrot.slane %v1818_v42, 1 }
  0x4e   :  { %1402 = vmatprep.subr.bf16.mxu0 %v1572_v63  ;;  %v192_v63 = vrot.slane %v190_v54, 1 }
  0x4f   :  { %1429 = vmatpush3.bf16.msra.mxu1 %v1571_v60  ;;  %v203_v60 = vsel %vm83_vm2, %v201_v50, %v202_v21 }
  0x50   :  { %1430 = vmatprep.subr.bf16.mxu1 %v1574_v4  ;;  %v204_v4 = vrot.slane %v1240_v32, 1  ;;  %v193_v6 = vor.u32 %v192_v63, %v188_v62 }
  0x51   :  { %1403 = vmatpush3.bf16.msra.mxu0 %v1573_v1  ;;  %v186_v1 = vsel %vm56_vm0, %v181_v56, %v185_v59 }
  0x52   :  { %1444 = vmatprep.subr.bf16.mxu0 %v1576_v9  ;;  %v206_v8 = vsel %vm83_vm2, %v204_v4, %v205_v5 }
  0x53   :  { %1431 = vmatpush3.bf16.msra.mxu1 %v1575_v7  ;;  %v197_v7 = vrot.slane %v195_v0, 1 }
  0x54   :  { %1051 = vmatmul.mubr.bf16.vlgmr.msra.gmra.mrb[8].mxu0 %v116_v17  ;;  %1482 = vmatprep.subr.bf16.mxu1 %v1579_v26 }
  0x55   :  { %1445 = vmatpush3.bf16.msra.mxu0 %v1577_v11  ;;  %1058 = vmatprep.mubr.bf16.mxu0 %v136_v35  ;;  %v198_v9 = vsel %vm56_vm0, %v193_v6, %v197_v7  ;;  %v1243_v11 = vld [vmem:[%s1853_s2] ss:$0 sm:$0xff]  ;;  %s1655_s2 = smov [#allocation5]  }
  0x56   :  { %1100 = vmatmul.mubr.bf16.vlgmr.msra.gmra.mrb[8].mxu1 %v142_v25  ;;  %1446 = vmatprep.subr.bf16.mxu0 %v1578_v18  ;;  %s1223_s15 = sshll.u32 %s1655_s2, 4  ;;  %s1224_s15 = int_to_ptr.vmem [resolvable:$true] %s1223_s15 }
  0x57   :  { %1483 = vmatpush3.bf16.msra.mxu1 %v1579_v26  ;;  %1107 = vmatprep.mubr.bf16.mxu1 %v162_v15  ;;  %s1626_s16 = scalar_lea.vmem %s1224_s15, 512  ;;  %p1631_p9 = scmp.lt.s32.totalorder %s1224_s15, %s1224_s15 }
  0x58   :  { %1484 = vmatprep.subr.bf16.mxu1 %v1582_v12  ;;  %p1627_p8 = scmp.ne.s32.totalorder %s1224_s15, %s1626_s16  ;;  %p1632_p10 = scmp.lt.s32.totalorder %s1626_s16, %s1626_s16 }
  0x59   :  { %1447 = vmatpush3.bf16.msra.mxu0 %v1580_v29 }
  0x5a   :  { %1448 = vmatprep.subr.bf16.mxu0 %v1581_v31  ;;  %p1633_p11 = por %p1632_p10, %p1631_p9 }
  0x5b   :  { %1485 = vmatpush3.bf16.msra.mxu1 %v1582_v12 }
  0x5c   :  { %1486 = vmatprep.subr.bf16.mxu1 %v1585_v37  ;;  %1059 = vmatmul.mubr.bf16.gmra.mrb[12].mxu0 %v119_v38  ;;  %p1634_p12 = pnand %p1633_p11, %p1627_p8 }
  0x5d   :  { %1449 = vmatpush3.bf16.msra.mxu0 %v1583_v39  ;;  %1148 = vmatprep.mubr.bf16.mxu0 %v186_v1 }
  0x5e   :  { %1108 = vmatmul.mubr.bf16.gmra.mrb[12].mxu1 %v145_v40  ;;  %1450 = vmatprep.subr.bf16.mxu0 %v1584_v41 }
  0x5f   :  { %1487 = vmatpush3.bf16.msra.mxu1 %v1585_v37  ;;  %1498 = vmatprep.mubr.bf16.mxu1 %v203_v60 }
  0x60   :  { %1488 = vmatprep.subr.bf16.mxu1 %v1588_v23 }
  0x61   :  { %1451 = vmatpush3.bf16.msra.mxu0 %v1586_v24 }
  0x62   :  { %1452 = vmatprep.subr.bf16.mxu0 %v1587_v43 }
  0x63   :  { %1489 = vmatpush3.bf16.msra.mxu1 %v1588_v23 }
  0x64   :  { %1490 = vmatprep.subr.bf16.mxu1 %v1591_v44 }
  0x65   :  { %1453 = vmatpush3.bf16.msra.mxu0 %v1589_v46 }
  0x66   :  { %1454 = vmatprep.subr.bf16.mxu0 %v1590_v47 }
  0x67   :  { %1491 = vmatpush3.bf16.msra.mxu1 %v1591_v44 }
  0x68   :  { %1492 = vmatprep.subr.bf16.mxu1 %v1594_v33 }
  0x69   :  { %1455 = vmatpush3.bf16.msra.mxu0 %v1592_v51 }
  0x6a   :  { %1456 = vmatprep.subr.bf16.mxu0 %v1593_v53 }
  0x6b   :  { %1493 = vmatpush3.bf16.msra.mxu1 %v1594_v33 }
  0x6c   :  { %1494 = vmatprep.subr.bf16.mxu1 %v1597_v55 }
  0x6d   :  { %1457 = vmatpush3.bf16.msra.mxu0 %v1595_v58 }
  0x6e   :  { %1458 = vmatprep.subr.bf16.mxu0 %v1596_v61 }
  0x6f   :  { %1495 = vmatpush3.bf16.msra.mxu1 %v1597_v55 }
  0x70   :  { %1496 = vmatprep.subr.bf16.mxu1 %v1601_v2 }
  0x71   :  { %1459 = vmatpush3.bf16.msra.mxu0 %v1598_v3 }
  0x73   :  { %1497 = vmatpush3.bf16.msra.mxu1 %v1601_v2 }
  0x74   :  { %1149 = vmatmul.mubr.bf16.vlgmr.msra.gmra.mrb[16].mxu0 %v1818_v42 }
  0x75   :  { %1156 = vmatprep.mubr.bf16.mxu0 %v198_v9 }
  0x76   :  { %1499 = vmatmul.mubr.bf16.vlgmr.msra.gmra.mrb[16].mxu1 %v206_v8 }
  0x7c   :  { %1157 = vmatmul.mubr.bf16.gmra.mrb[20].mxu0 %v1240_v32 }
 0x107   :  { %v1348_v10 = vpop.f32.mrb[0].mxu0 }
 0x108   :  { %v1349_v13 = vpop.f32.mrb[1].mxu0 }
 0x109   :  { %v1376_v14 = vpop.f32.mrb[0].mxu1  ;;  %v1350_v16 = vadd.f32 %v1349_v13, %v1348_v10  ;;  %v1351_v17 = vpop.f32.mrb[2].mxu0 }
 0x10a   :  { %v1377_v18 = vpop.f32.mrb[1].mxu1  ;;  %v1352_v19 = vpop.f32.mrb[3].mxu0 }
 0x10b   :  { %v1378_v20 = vadd.f32 %v1377_v18, %v1376_v14  ;;  %v1379_v25 = vpop.f32.mrb[2].mxu1  ;;  %v955_v26 = vadd.f32 %v1350_v16, %v1243_v11  ;;  %v1353_v27 = vadd.f32 %v1352_v19, %v1351_v17 }
 0x10c   :  { %v1380_v28 = vpop.f32.mrb[3].mxu1 }
 0x10d   :  { %v1381_v29 = vadd.f32 %v1380_v28, %v1379_v25  ;;  %v958_v35 = vadd.f32 %v1353_v27, %v1243_v11  ;;  %v1004_v34 = vadd.f32 %v1378_v20, %v955_v26 }
 0x10f   :  { %v1007_v12 = vadd.f32 %v1381_v29, %v958_v35  ;;  %v1354_v15 = vpop.f32.mrb[4].mxu0 }
 0x110   :  { %v1355_v30 = vpop.f32.mrb[5].mxu0 }
 0x111   :  { %v1382_v31 = vpop.f32.mrb[4].mxu1  ;;  %v1356_v36 = vadd.f32 %v1355_v30, %v1354_v15  ;;  %v1357_v37 = vpop.f32.mrb[6].mxu0 }
 0x112   :  { %v1383_v38 = vpop.f32.mrb[5].mxu1  ;;  %v1358_v39 = vpop.f32.mrb[7].mxu0 }
 0x113   :  { %v1384_v40 = vadd.f32 %v1383_v38, %v1382_v31  ;;  %v1385_v41 = vpop.f32.mrb[6].mxu1  ;;  %v963_v23 = vadd.f32 %v1356_v36, %v1243_v11  ;;  %v1359_v42 = vadd.f32 %v1358_v39, %v1357_v37 }
 0x114   :  { %v1386_v24 = vpop.f32.mrb[7].mxu1 }
 0x115   :  { %v1387_v43 = vadd.f32 %v1386_v24, %v1385_v41  ;;  %v966_v44 = vadd.f32 %v1359_v42, %v1243_v11  ;;  %v1012_v45 = vadd.f32 %v1384_v40, %v963_v23 }
 0x117   :  { %v1015_v46 = vadd.f32 %v1387_v43, %v966_v44 }
 0x127   :  { %v1404_v47 = vpop.f32.mrb[8].mxu0 }
 0x128   :  { %v1405_v48 = vpop.f32.mrb[9].mxu0 }
 0x129   :  { %v1432_v32 = vpop.f32.mrb[8].mxu1  ;;  %v1406_v33 = vadd.f32 %v1405_v48, %v1404_v47  ;;  %v1407_v49 = vpop.f32.mrb[10].mxu0 }
 0x12a   :  { %v1433_v50 = vpop.f32.mrb[9].mxu1  ;;  %v1408_v51 = vpop.f32.mrb[11].mxu0 }
 0x12b   :  { %v1434_v52 = vadd.f32 %v1433_v50, %v1432_v32  ;;  %v1435_v53 = vpop.f32.mrb[10].mxu1  ;;  %v1053_v54 = vadd.f32 %v1406_v33, %v1004_v34  ;;  %v1409_v55 = vadd.f32 %v1408_v51, %v1407_v49 }
 0x12c   :  { %v1436_v56 = vpop.f32.mrb[11].mxu1 }
 0x12d   :  { %v1437_v57 = vadd.f32 %v1436_v56, %v1435_v53  ;;  %v1056_v21 = vadd.f32 %v1409_v55, %v1007_v12  ;;  %v1102_v22 = vadd.f32 %v1434_v52, %v1053_v54 }
 0x12f   :  { %v1105_v58 = vadd.f32 %v1437_v57, %v1056_v21  ;;  %v1410_v59 = vpop.f32.mrb[12].mxu0 }
 0x130   :  { %v1411_v60 = vpop.f32.mrb[13].mxu0 }
 0x131   :  { %v1438_v61 = vpop.f32.mrb[12].mxu1  ;;  %v1412_v62 = vadd.f32 %v1411_v60, %v1410_v59  ;;  %v1413_v63 = vpop.f32.mrb[14].mxu0 }
 0x132   :  { %v1439_v0 = vpop.f32.mrb[13].mxu1  ;;  %v1414_v1 = vpop.f32.mrb[15].mxu0 }
 0x133   :  { %v1440_v2 = vadd.f32 %v1439_v0, %v1438_v61  ;;  %v1441_v3 = vpop.f32.mrb[14].mxu1  ;;  %v1061_v4 = vadd.f32 %v1412_v62, %v1012_v45  ;;  %v1415_v5 = vadd.f32 %v1414_v1, %v1413_v63 }
 0x134   :  { %v1442_v6 = vpop.f32.mrb[15].mxu1 }
 0x135   :  { %v1443_v7 = vadd.f32 %v1442_v6, %v1441_v3  ;;  %v1064_v8 = vadd.f32 %v1415_v5, %v1015_v46  ;;  %v1110_v9 = vadd.f32 %v1440_v2, %v1061_v4 }
 0x137   :  { %v1113_v10 = vadd.f32 %v1443_v7, %v1064_v8 }
 0x147   :  { %v1460_v11 = vpop.f32.mrb[16].mxu0 }
 0x148   :  { %v1461_v13 = vpop.f32.mrb[17].mxu0 }
 0x149   :  { %v1500_v14 = vpop.f32.mrb[16].mxu1  ;;  %v1462_v16 = vadd.f32 %v1461_v13, %v1460_v11  ;;  %v1463_v17 = vpop.f32.mrb[18].mxu0 }
 0x14a   :  { %v1199_v18 = vpop.f32.mrb[17].mxu1  ;;  %v1464_v19 = vpop.f32.mrb[19].mxu0 }
 0x14b   :  { %v1501_v20 = vpop.f32.mrb[18].mxu1  ;;  %v1465_v25 = vadd.f32 %v1464_v19, %v1463_v17  ;;  %v1151_v26 = vadd.f32 %v1462_v16, %v1102_v22 }
 0x14c   :  { %v1202_v27 = vpop.f32.mrb[19].mxu1 }
 0x14d   :  { %v1200_v28 = vadd.f32 %v1199_v18, %v1151_v26  ;;  %v1154_v29 = vadd.f32 %v1465_v25, %v1105_v58 }
 0x14f   :  { %1214 = vst [vmem:[#allocation5] sm:$0xff] %v1200_v28  ;;  %v1203_v35 = vadd.f32 %v1202_v27, %v1154_v29  ;;  %v1466_v34 = vpop.f32.mrb[20].mxu0 }
 0x150   :  { %v1467_v12 = vpop.f32.mrb[21].mxu0 }
 0x151   :  { %1215 = vst [vmem:[#allocation5 + $0x8] sm:$0xff] %v1203_v35  ;;  %v1468_v15 = vadd.f32 %v1467_v12, %v1466_v34  ;;  %v1469_v30 = vpop.f32.mrb[22].mxu0 }
 0x152   :  { %v1470_v31 = vpop.f32.mrb[23].mxu0 }
 0x153   :  { %v1159_v36 = vadd.f32 %v1468_v15, %v1110_v9  ;;  %v1471_v37 = vadd.f32 %v1470_v31, %v1469_v30 }
 0x155   :  { %v1208_v38 = vadd.f32 %v1500_v14, %v1159_v36  ;;  %v1162_v39 = vadd.f32 %v1471_v37, %v1113_v10 }
 0x157   :  { %1216 = vst [vmem:[#allocation5 + $0x10] sm:$0xff] %v1208_v38  ;;  %v1211_v40 = vadd.f32 %v1501_v20, %v1162_v39 }
 0x159   :  { %1217 = vst [vmem:[#allocation5 + $0x18] sm:$0xff] %v1211_v40 }
 0x15a   :  { %1637 = shalt.err (!%p1634_p12)
}
 0x15b   :  { %s1638_s19 = scalar_lea.hbm %s1854_s3, 512 }
 0x15c   :  { %p1639_p13 = scmp.ne.s32.totalorder %s1854_s3, %s1638_s19  ;;  %p1642_p0 = scmp.lt.u32.totalorder %s1638_s19, %s1854_s3 }
 0x15e   :  { %p1644_p1 = pnand %p1642_p0, %p1639_p13 }
 0x160   :  { %1647 = shalt.err (!%p1644_p1)
}
 0x161   :  { %s1656_s24 = smov 128   ;;  %s1657_s25 = smov 8  }
 0x162   :  { %1229 = dma.vmem_to_hbm [thread:$0]  %s1224_s15, 512, %s1854_s3, [#allocation4], %s1656_s24, %s1656_s24, %s1657_s25  }
 0x163   :  { %1650 = dma.done.wait [#allocation4], 512  }
 0x164   :  { %1651 = vsyncadd [#allocation4], 4294966784 }
 0x165   :  { %1233 = vsyncpa [#allocation3], 1 }
 0x166   :  { %1234 = vsyncpa [#allocation4], 1 }

</bundles_post_ra>
